<compile_context>
chip_gen: v7x
topology: tpu7x:2x2x1
jax: 0.10.0
libtpu: 0.0.40
codegen_flags: <defaults>
</compile_context>

<pallas_src>
import functools

import jax
import jax.numpy as jnp
from jax.experimental import pallas as pl
from jax.experimental.pallas import tpu as pltpu


def _instance_norm1d_kernel(x_ref, w_ref, b_ref, o_ref, *, eps, inv_t):
    # x_ref / o_ref: (TC, T_pad); w_ref / b_ref: (TC, 1)
    x = x_ref[...].astype(jnp.float32)

    # Single-pass statistics. Padded lanes are zero, so they contribute nothing
    # to the sums; dividing by the true T (inv_t) keeps mean/var exact.
    s = jnp.sum(x, axis=-1, keepdims=True)             # (TC, 1)  XLU reduce
    ss = jnp.sum(x * x, axis=-1, keepdims=True)        # (TC, 1)  XLU reduce
    mean = s * inv_t
    var = jnp.maximum(ss * inv_t - mean * mean, 0.0)   # biased (unbiased=False)
    inv_std = jax.lax.rsqrt(var + eps)                 # EUP

    # Fold affine into per-channel scale/shift: epilogue is x*scale + shift.
    w = w_ref[...].astype(jnp.float32)                 # (TC, 1)
    b = b_ref[...].astype(jnp.float32)                 # (TC, 1)
    scale = inv_std * w
    shift = b - mean * scale

    o_ref[...] = (x * scale + shift).astype(o_ref.dtype)


def _round_up(v, m):
    return (v + m - 1) // m * m


def _choose_channel_tile(c_pad8, t_pad, target_block_bytes=4 * 1024 * 1024):
    # Largest multiple of 8 such that a (TC, T_pad) f32 tile stays ~<= target.
    max_tc = max(8, (target_block_bytes // (t_pad * 4)) // 8 * 8)
    return min(c_pad8, max_tc)


def instance_norm1d(x, weight=None, bias=None, eps=1e-5):
    """InstanceNorm1d forward. x: (N, C, T); weight/bias: (C,) or None."""
    N, C, T = x.shape
    if weight is None:
        weight = jnp.ones((C,), dtype=jnp.float32)
    if bias is None:
        bias = jnp.zeros((C,), dtype=jnp.float32)

    # Lane-dense T (multiple of 128); sublane/tile-friendly C.
    T_pad = _round_up(T, 128)
    C_pad8 = _round_up(C, 8)
    TC = _choose_channel_tile(C_pad8, T_pad)
    C_pad = _round_up(C, TC)

    x_p = x
    if (T_pad != T) or (C_pad != C):
        x_p = jnp.pad(x, ((0, 0), (0, C_pad - C), (0, T_pad - T)))
    w2 = jnp.pad(weight.astype(jnp.float32), (0, C_pad - C),
                 constant_values=1.0).reshape(C_pad, 1)
    b2 = jnp.pad(bias.astype(jnp.float32), (0, C_pad - C),
                 constant_values=0.0).reshape(C_pad, 1)

    kernel = functools.partial(
        _instance_norm1d_kernel, eps=float(eps), inv_t=1.0 / float(T)
    )

    out = pl.pallas_call(
        kernel,
        out_shape=jax.ShapeDtypeStruct((N, C_pad, T_pad), x.dtype),
        grid_spec=pltpu.PrefetchScalarGridSpec(
            num_scalar_prefetch=0,
            grid=(N, C_pad // TC),
            in_specs=[
                # Leading batch dim squeezed -> kernel sees clean 2D tiles.
                pl.BlockSpec((None, TC, T_pad), lambda n, c: (n, c, 0)),
                pl.BlockSpec((TC, 1), lambda n, c: (c, 0)),
                pl.BlockSpec((TC, 1), lambda n, c: (c, 0)),
            ],
            out_specs=pl.BlockSpec((None, TC, T_pad), lambda n, c: (n, c, 0)),
        ),
        compiler_params=pltpu.CompilerParams(
            dimension_semantics=("parallel", "parallel"),
            vmem_limit_bytes=48 * 1024 * 1024,
        ),
    )(x_p, w2, b2)

    if (T_pad != T) or (C_pad != C):
        out = out[:, :C, :T]
    return out


if __name__ == "__main__":
    key = jax.random.PRNGKey(0)
    N, C, T = 2, 4, 16
    x = jax.random.normal(key, (N, C, T), dtype=jnp.float32)

    # Matches torch.nn.Parameter(torch.ones / torch.zeros) init.
    weight = jnp.ones((C,), dtype=jnp.float32)
    bias = jnp.zeros((C,), dtype=jnp.float32)

    out = instance_norm1d(x, weight, bias, eps=1e-5)
    out = jax.block_until_ready(out)

    # Pure-JAX reference (biased variance, matching unbiased=False).
    mean = jnp.mean(x, axis=2, keepdims=True)
    var = jnp.mean((x - mean) ** 2, axis=2, keepdims=True)
    ref = (x - mean) / jnp.sqrt(var + 1e-5)
    ref = ref * weight.reshape(1, C, 1) + bias.reshape(1, C, 1)
    assert out.shape == ref.shape, "shape mismatch vs reference"
    assert jnp.allclose(out, ref, atol=1e-4, rtol=1e-4), "mismatch vs reference"

    print("KERNEL_OK")
</pallas_src>

<mosaic_0001>
module attributes {stable_mosaic.version = 11 : i64} {
  func.func @_instance_norm1d_kernel(%arg0: i32, %arg1: i32, %arg2: memref<1x8x128xf32, #tpu.memory_space<vmem>>, %arg3: memref<8x1xf32, #tpu.memory_space<vmem>>, %arg4: memref<8x1xf32, #tpu.memory_space<vmem>>, %arg5: memref<1x8x128xf32, #tpu.memory_space<vmem>>) attributes {dimension_semantics = [#tpu.dimension_semantics<parallel>, #tpu.dimension_semantics<parallel>], iteration_bounds = array<i64: 2, 1>, scalar_prefetch = 0 : i64, scratch_operands = 0 : i64, tpu.core_type = #tpu.core_type<tc>, window_params = [{transform_indices = @transform_0, window_bounds = array<i64: 1, 8, 128>}, {transform_indices = @transform_1, window_bounds = array<i64: 8, 1>}, {transform_indices = @transform_2, window_bounds = array<i64: 8, 1>}, {transform_indices = @transform_3, window_bounds = array<i64: 1, 8, 128>}]} {
    %c0 = arith.constant 0 : index
    %c0_0 = arith.constant 0 : index
    %c0_1 = arith.constant 0 : index
    %0 = vector.load %arg2[%c0, %c0_0, %c0_1] : memref<1x8x128xf32, #tpu.memory_space<vmem>>, vector<1x8x128xf32>
    %1 = vector.shape_cast %0 : vector<1x8x128xf32> to vector<8x128xf32>
    %cst = arith.constant dense<0.000000e+00> : vector<8xf32>
    %2 = vector.multi_reduction <add>, %1, %cst [1] : vector<8x128xf32> to vector<8xf32>
    %3 = vector.shape_cast %2 : vector<8xf32> to vector<8x1xf32>
    %4 = arith.mulf %1, %1 : vector<8x128xf32>
    %cst_2 = arith.constant dense<0.000000e+00> : vector<8xf32>
    %5 = vector.multi_reduction <add>, %4, %cst_2 [1] : vector<8x128xf32> to vector<8xf32>
    %6 = vector.shape_cast %5 : vector<8xf32> to vector<8x1xf32>
    %cst_3 = arith.constant 6.250000e-02 : f32
    %7 = vector.broadcast %cst_3 : f32 to vector<8x1xf32>
    %8 = arith.mulf %3, %7 : vector<8x1xf32>
    %cst_4 = arith.constant 6.250000e-02 : f32
    %9 = vector.broadcast %cst_4 : f32 to vector<8x1xf32>
    %10 = arith.mulf %6, %9 : vector<8x1xf32>
    %11 = arith.mulf %8, %8 : vector<8x1xf32>
    %12 = arith.subf %10, %11 : vector<8x1xf32>
    %cst_5 = arith.constant 0.000000e+00 : f32
    %13 = vector.broadcast %cst_5 : f32 to vector<8x1xf32>
    %14 = arith.maximumf %12, %13 : vector<8x1xf32>
    %cst_6 = arith.constant 9.99999974E-6 : f32
    %15 = vector.broadcast %cst_6 : f32 to vector<8x1xf32>
    %16 = arith.addf %14, %15 : vector<8x1xf32>
    %17 = math.rsqrt %16 : vector<8x1xf32>
    %c0_7 = arith.constant 0 : index
    %c0_8 = arith.constant 0 : index
    %18 = vector.load %arg3[%c0_7, %c0_8] : memref<8x1xf32, #tpu.memory_space<vmem>>, vector<8x1xf32>
    %c0_9 = arith.constant 0 : index
    %c0_10 = arith.constant 0 : index
    %19 = vector.load %arg4[%c0_9, %c0_10] : memref<8x1xf32, #tpu.memory_space<vmem>>, vector<8x1xf32>
    %20 = arith.mulf %17, %18 : vector<8x1xf32>
    %21 = arith.mulf %8, %20 : vector<8x1xf32>
    %22 = arith.subf %19, %21 : vector<8x1xf32>
    %23 = vector.broadcast %20 : vector<8x1xf32> to vector<8x128xf32>
    %24 = arith.mulf %1, %23 : vector<8x128xf32>
    %25 = vector.broadcast %22 : vector<8x1xf32> to vector<8x128xf32>
    %26 = arith.addf %24, %25 : vector<8x128xf32>
    %c0_11 = arith.constant 0 : index
    %c0_12 = arith.constant 0 : index
    %c0_13 = arith.constant 0 : index
    %27 = vector.load %arg5[%c0_11, %c0_12, %c0_13] : memref<1x8x128xf32, #tpu.memory_space<vmem>>, vector<1x8x128xf32>
    %28 = vector.shape_cast %27 : vector<1x8x128xf32> to vector<8x128xf32>
    %29 = vector.shape_cast %26 : vector<8x128xf32> to vector<1x8x128xf32>
    tpu.vector_store %arg5[%c0_11, %c0_12, %c0_13], %29 {strides = array<i32>} : memref<1x8x128xf32, #tpu.memory_space<vmem>>, vector<1x8x128xf32>,
    return
  }
  func.func @transform_0(%arg0: i32, %arg1: i32) -> (i32, i32, i32) {
    %c0_i32 = arith.constant 0 : i32
    %c0_i32_0 = arith.constant 0 : i32
    return %arg0, %arg1, %c0_i32 : i32, i32, i32
  }
  func.func @transform_1(%arg0: i32, %arg1: i32) -> (i32, i32) {
    %c0_i32 = arith.constant 0 : i32
    %c0_i32_0 = arith.constant 0 : i32
    return %arg1, %c0_i32 : i32, i32
  }
  func.func @transform_2(%arg0: i32, %arg1: i32) -> (i32, i32) {
    %c0_i32 = arith.constant 0 : i32
    %c0_i32_0 = arith.constant 0 : i32
    return %arg1, %c0_i32 : i32, i32
  }
  func.func @transform_3(%arg0: i32, %arg1: i32) -> (i32, i32, i32) {
    %c0_i32 = arith.constant 0 : i32
    %c0_i32_0 = arith.constant 0 : i32
    return %arg0, %arg1, %c0_i32 : i32, i32, i32
  }
}

</mosaic_0001>

<bundles_post_ra>
// kernel: tpu_custom_call.1
= control target key start
LH: loop header
LB: loop body
LE: loop exit
PB: predicated region body
PF: predicated region fallthrough
CT: control target
= control target key end

     0   :  { %8 = vsyncpa [#allocation3], 0  ;;  %s665_s0 = inlined_call_operand.vmem [shape: f32[2,8,128], index: 0, kind: input, shape index: {}]   ;;  %s666_s1 = inlined_call_operand.vmem [shape: f32[8,1], index: 1, kind: input, shape index: {}]   ;;  %s667_s2 = inlined_call_operand.vmem [shape: f32[8,1], index: 2, kind: input, shape index: {}]   ;;  %s668_s3 = inlined_call_operand.hbm [shape: f32[2,8,128], index: 3, kind: output, shape index: {}]  }
   0x1   :  { %10 = vsyncpa [#allocation3 + $0x1], 0  ;;  %s547_s12 = smov 0   ;;  %s549_s13 = smov 0  }
   0x2   :  { %s551_s14 = smov 0   ;;  %s553_s15 = smov 0  }
   0x3   :  { %s555_s16 = smov 0   ;;  %s557_s17 = smov 0  }
   0x4 LB: > { %s372_s18 = sadd.s32 4294967295, %s523_s17   ;;  %s373_s19 = sadd.s32 4294967294, %s523_s17   ;;  %s523_s17 = sphi %s557_s17, %s16_s17   ;;  %s519_s16 = sphi %s555_s16, %s675_s16   ;;  %s515_s15 = sphi %s553_s15, %s674_s15   ;;  %s511_s14 = sphi %s551_s14, %s673_s14   ;;  %s507_s13 = sphi %s549_s13, %s672_s13   ;;  %s503_s12 = sphi %s547_s12, %s671_s12  }
   0x5   : > { %s28_s20 = sadd.s32 1, %s519_s16  ;;  %s117_s21 = sadd.s32 1, %s511_s14 }
   0x6   : > { %p30_p0 = scmp.ge.s32.totalorder %s28_s20, 2  ;;  %p127_p1 = scmp.ne.s32.totalorder %s511_s14, %s507_s13 }
   0x7   : > { %p128_p2 = scmp.eq.s32.totalorder %s372_s18, 1  ;;  %p133_p3 = scmp.ne.s32.totalorder %s507_s13, %s503_s12 }
   0x8   : > { %s677_s20 = smov (%p30_p0, %s28_s20), 0  ;;  %p134_p5 = scmp.eq.s32.totalorder %s373_s19, 1 }
   0x9   : > { %p587_p4 = por %p128_p2, %p127_p1  ;;  %s112_s23 = ssub.s32 %s519_s16, %s677_s20 }
   0xa   : > { %p378_p6 = scmp.ge.s32.totalorder %s523_s17, 1  ;;  %p115_p7 = scmp.eq.s32.totalorder %s112_s23, 0 }
   0xb   : > { %p594_p8 = por %p134_p5, %p133_p3  ;;  %p176_p9 = scmp.lt.s32.totalorder %s523_s17, 3 }
   0xc   : > { %s600_s25 = scalar_select %p115_p7, %s511_s14, %s117_s21  }
   0xd   : > { %p177_p10 = pnand %p378_p6, %p176_p9 }
   0xe   : > { %p210_p11 = scmp.lt.s32.totalorder (!%p177_p10), %s515_s15, 1  ;;  %v525_v2 = vmov (!%p177_p10), 0   ;;  %v238_v11 = vld [vmem:[%s666_s1] sm:$0xff] (!%p177_p10)  ;;  %s207_s8 = sand.u32 (!%p177_p10), 1, %s507_s13  }
   0xf   : > { %180 = sbr.rel (%p177_p10) target bundleno = 342 (0x156), region = 32  ;;  %441 = vset.pattern.permute.xlu1 (!%p177_p10), %v525_v2  ;;  %442 = vset.pattern.permute.xlu0 (!%p177_p10), %v525_v2  ;;  %v239_v14 = vld [vmem:[%s667_s2] sm:$0xff] (!%p177_p10)  ;;  %s379_s9 = sshll.u32 (!%p177_p10), %s207_s8, 3 }
  0x10   : > { %s382_s10 = sshll.u32 (!%p177_p10), %s515_s15, 7  ;;  %s209_s11 = scalar_lea.vmem (!%p177_p10), [#allocation2], %s379_s9 }
  0x11   : > { %s271_s18 = sshll.u32 (!%p177_p10), %s209_s11, 4  ;;  %s618_s23 = scalar_lea.hbm (!%p177_p10), %s668_s3, %s382_s10  ;;  %s620_s18 = int_to_ptr.vmem [resolvable:$true] %s271_s18 }
  0x16   : > { %s211_s26 = scalar_select %p210_p11, %s515_s15, 1 }
  0x17   : > { %s526_s15 = smov [#allocation2]  }
  0x18   : > { %s380_s27 = sshll.u32 %s211_s26, 3  ;;  %s257_s26 = scalar_lea.sflag [#allocation3], %s207_s8 }
  0x19   : > { %s216_s30 = scalar_lea.vmem %s665_s0, %s380_s27  ;;  %s445_s27 = scalar_lea.vmem %s620_s18, 128 }
  0x1a   : > { %v225_v0 = vld [vmem:[%s216_s30] sm:$0xff]  ;;  %p446_p12 = scmp.ne.s32.totalorder %s620_s18, %s445_s27  ;;  %s449_s28 = sshll.u32 %s526_s15, 4  ;;  %s450_s28 = int_to_ptr.vmem [resolvable:$false] %s449_s28 }
  0x1b   : > { %226 = vadd.xlane.f32.xlu0 %v225_v0  ;;  %v228_v1 = vmul.f32 %v225_v0, %v225_v0  ;;  %s451_s29 = scalar_lea.vmem %s450_s28, 256  ;;  %p452_p1 = scmp.lt.s32.totalorder %s620_s18, %s450_s28 }
  0x1c   : > { %p447_p13 = pnand %p446_p12, %p587_p4  ;;  %p453_p2 = scmp.lt.s32.totalorder %s451_s29, %s445_s27 }
  0x1e   : > { %p448_p0 = pneg %p447_p13  ;;  %p454_p3 = por %p453_p2, %p452_p1 }
  0x1f   : > { %229 = vadd.xlane.f32.xlu0 %v228_v1 }
  0x20   : > { %p455_p5 = pnand %p454_p3, %p448_p0 }
  0xa8   : > { %v227_v3 = vpop.xlane.xlu0 %226 }
  0xa9   : > { %v231_v4 = vmul.f32 0.0625, %v227_v3 }
  0xab   : > { %v233_v6 = vmul.f32 %v231_v4, %v231_v4 }
  0xac   : > { %v230_v5 = vpop.xlane.xlu0 %229 }
  0xad   : > { %v232_v7 = vmul.f32 0.0625, %v230_v5 }
  0xaf   : > { %v234_v8 = vsub.f32 %v232_v7, %v233_v6 }
  0xb1   : > { %v235_v9 = vmax.f32 %v234_v8, 0.0 }
  0xb3   : > { %v236_v10 = vadd.f32 1e-05, %v235_v9 }
  0xb5   : > { %443 = vrsqrt.f32 %v236_v10 }
  0xbf   : > { %v444_v12 = vpop.eup %443 }
  0xc0   : > { %v240_v13 = vmul.f32 %v444_v12, %v238_v11 }
  0xc2   : > { %245 = vperm.xlu1 %441, %v240_v13   ;;  %v241_v15 = vmul.f32 %v240_v13, %v231_v4 }
  0xc4   : > { %v242_v16 = vsub.f32 %v239_v14, %v241_v15 }
  0xc6   : > { %251 = vperm.xlu1 %441, %v242_v16  }
 0x141   : > { %v246_v17 = vpop.permute.xlu1 %245 }
 0x142   : > { %v248_v18 = vmul.f32 %v246_v17, %v225_v0 }
 0x145   : > { %v252_v19 = vpop.permute.xlu1 %251 }
 0x146   : > { %v254_v20 = vadd.f32 %v252_v19, %v248_v18 }
 0x148   : > { %255 = vst [vmem:[%s209_s11] sm:$0xff] %v254_v20 }
 0x149   : > { %458 = shalt.err (!%p455_p5)
}
 0x14a   : > { %s459_s30 = scalar_lea.hbm %s618_s23, 128  ;;  %s463_s6 = scalar_lea.hbm %s668_s3, 256 }
 0x14b   : > { %p460_p6 = scmp.ne.s32.totalorder %s618_s23, %s459_s30  ;;  %p464_p10 = scmp.lt.u32.totalorder %s618_s23, %s668_s3 }
 0x14c   : > { %p465_p11 = scmp.lt.u32.totalorder %s463_s6, %s459_s30  ;;  %p467_p13 = scmp.lt.u32.totalorder %s459_s30, %s618_s23 }
 0x14d   : > { %p461_p7 = pnand %p460_p6, %p587_p4 }
 0x14e   : > { %p466_p12 = por %p465_p11, %p464_p10 }
 0x14f   : > { %p462_p9 = pneg %p461_p7 }
 0x150   : > { %p468_p0 = por %p467_p13, %p466_p12 }
 0x152   : > { %p469_p1 = pnand %p468_p0, %p462_p9 }
 0x154   : > { %472 = shalt.err (!%p469_p1)
}
 0x155   : > { %385 = dma.vmem_to_hbm [thread:$0]  (%p587_p4), %s620_s18, 128, %s618_s23, %s257_s26  }
 0x156 PF: > { %p391_p2 = scmp.ge.s32.totalorder %s523_s17, 2  ;;  %s283_s9 = sand.u32 1, %s503_s12  }
 0x157   : > { %s284_s10 = scalar_lea.sflag [#allocation3], %s283_s9 }
 0x158   : > { %p388_p3 = pnand %p391_p2, %p594_p8 }
 0x15a   : > { %498 = dma.done.wait (!%p388_p3), %s284_s10, 128  }
 0x15b   : > { %500 = vsyncadd (!%p388_p3), %s284_s10, 4294967168  ;;  %s16_s17 = sadd.s32 1, %s523_s17   ;;  %s671_s12 = smov %s507_s13 }
 0x15c   : > { %p13_p5 = scmp.ge.s32.totalorder %s16_s17, 4   ;;  %s672_s13 = smov %s511_s14 }
 0x15d   : > { %s673_s14 = smov %s600_s25  ;;  %s674_s15 = smov %s519_s16 }
 0x15e   : > { %s675_s16 = smov %s677_s20  ;;  %15 = sbr.rel (!%p13_p5) target bundleno = 4 (0x4), region = 73 }
 0x165   :  { %289 = vsyncpa [#allocation3], 1 }
 0x166   :  { %291 = vsyncpa [#allocation3 + $0x1], 1 }

</bundles_post_ra>
